<compile_context>
chip_gen: v7x
topology: tpu7x:2x2x1
jax: 0.10.0
libtpu: 0.0.40
codegen_flags: <defaults>
</compile_context>

<pallas_src>
import functools

import jax
import jax.numpy as jnp
from jax import lax
from jax.experimental import pallas as pl
from jax.experimental.pallas import tpu as pltpu


_TARGET_X_BLOCK_BYTES = 2 * 1024 * 1024   # ~2 MiB of x streamed per grid step
_UNROLL_C_MAX = 32                        # python-unroll the channel loop up to this C
_CHUNK_ROWS = 32                          # sublane rows per in-kernel accumulator chunk


def _rgb_kernel_dense(mod_ref, *refs, has_prev, unroll_c):
    """Dense layout: x (1,C,tr,128), prev/out (1,1,tr,128), mod (B,C) f32 in SMEM."""
    if has_prev:
        x_ref, prev_ref, o_ref = refs
    else:
        x_ref, o_ref = refs
        prev_ref = None
    b = pl.program_id(0)
    n_c = x_ref.shape[1]
    tr = x_ref.shape[2]

    def do_rows(r0, nrows):
        rows = pl.ds(r0, nrows)
        if unroll_c:
            acc = x_ref[0, 0, rows, :].astype(jnp.float32) * mod_ref[b, 0]
            for ci in range(1, n_c):
                acc = acc + x_ref[0, ci, rows, :].astype(jnp.float32) * mod_ref[b, ci]
        else:
            def chan(ci, acc):
                return acc + x_ref[0, ci, rows, :].astype(jnp.float32) * mod_ref[b, ci]
            acc = lax.fori_loop(0, n_c, chan,
                                jnp.zeros((nrows, 128), jnp.float32), unroll=4)
        if prev_ref is not None:
            acc = acc + prev_ref[0, 0, rows, :].astype(jnp.float32)
        o_ref[0, 0, rows, :] = acc.astype(o_ref.dtype)

    chunk = min(_CHUNK_ROWS, tr)
    n_full = tr // chunk
    rem = tr - n_full * chunk
    if n_full == 1:
        do_rows(0, chunk)
    elif n_full > 1:
        def body(i, carry):
            do_rows(pl.multiple_of(i * chunk, chunk), chunk)
            return carry
        lax.fori_loop(0, n_full, body, 0)
    if rem > 0:
        do_rows(n_full * chunk, rem)


def _rgb_kernel_flat(mod_ref, *refs, has_prev, unroll_c):
    """Ragged-S fallback: x (1,C,ts), prev/out (1,1,ts), mod (B,C) f32 in SMEM."""
    if has_prev:
        x_ref, prev_ref, o_ref = refs
    else:
        x_ref, o_ref = refs
        prev_ref = None
    b = pl.program_id(0)
    n_c = x_ref.shape[1]
    ts = x_ref.shape[2]

    if unroll_c:
        acc = x_ref[0, 0:1, :].astype(jnp.float32) * mod_ref[b, 0]
        for ci in range(1, n_c):
            acc = acc + x_ref[0, ci:ci + 1, :].astype(jnp.float32) * mod_ref[b, ci]
    else:
        def chan(ci, acc):
            return acc + x_ref[0, pl.ds(ci, 1), :].astype(jnp.float32) * mod_ref[b, ci]
        acc = lax.fori_loop(0, n_c, chan, jnp.zeros((1, ts), jnp.float32), unroll=4)
    if prev_ref is not None:
        acc = acc + prev_ref[0, :, :].astype(jnp.float32)
    o_ref[0, :, :] = acc.astype(o_ref.dtype)


def rgb_block_forward(x, prev_rgb, istyle, params):
    """x: (B, C, D, H, W), prev_rgb: (B, 1, D, H, W) or None, istyle: (B, L)."""
    b, c, d, h, w = x.shape
    s = d * h * w
    out_dtype = x.dtype
    x_item = jnp.dtype(x.dtype).itemsize
    out_item = jnp.dtype(out_dtype).itemsize
    has_prev = prev_rgb is not None
    prev_item = jnp.dtype(prev_rgb.dtype).itemsize if has_prev else 0

    # ---- Hoisted style Linear + modulation (tiny, plain XLA, f32) ------------
    style = (istyle.astype(jnp.float32) @ params["to_style_w"].T.astype(jnp.float32)
             + params["to_style_b"].astype(jnp.float32))                       # (B, C)
    mod = params["conv_w"].reshape(1, c).astype(jnp.float32) * (style + 1.0)   # (B, C)

    unroll_c = c <= _UNROLL_C_MAX
    mod_spec = pl.BlockSpec(memory_space=pltpu.MemorySpace.SMEM)

    if s % 128 == 0:
        # Sublane/lane-dense layout: S -> (R, 128) is a free reshape (no HBM copy).
        r = s // 128
        rows_target = max(8, _TARGET_X_BLOCK_BYTES // (c * 128 * x_item))
        tr = min(rows_target, r)
        if b == 1 and r >= 16:            # keep >= 2 grid steps so both v7x TCs get work
            tr = min(tr, -(-r // 2))
        if tr < r:
            tr = max(8, (tr // 8) * 8)
        n_blk = pl.cdiv(r, tr)

        x_in = x.reshape(b, c, r, 128)
        in_specs = [mod_spec,
                    pl.BlockSpec((1, c, tr, 128), lambda i, j: (i, 0, j, 0))]
        operands = [mod, x_in]
        if has_prev:
            in_specs.append(pl.BlockSpec((1, 1, tr, 128), lambda i, j: (i, 0, j, 0)))
            operands.append(prev_rgb.reshape(b, 1, r, 128))   # native dtype, cast in-kernel
        out_spec = pl.BlockSpec((1, 1, tr, 128), lambda i, j: (i, 0, j, 0))
        out_shape = jax.ShapeDtypeStruct((b, 1, r, 128), out_dtype)
        kernel = functools.partial(_rgb_kernel_dense, has_prev=has_prev, unroll_c=unroll_c)
        block_elems = tr * 128
    else:
        # Ragged fallback: flat lane layout, NO wrapper-side pad / output slice.
        # Pallas handles the partial final block; garbage in OOB input lanes only
        # affects output columns >= S, which are dropped (reduction is over C only).
        lanes_target = max(128, min(8192, _TARGET_X_BLOCK_BYTES // (c * x_item)))
        if s <= 128:
            ts = s
        else:
            ts = max(128, (min(lanes_target, s) // 128) * 128)
            if b == 1 and s >= 256:
                ts = max(128, (min(ts, -(-s // 2)) // 128) * 128)
        n_blk = pl.cdiv(s, ts)

        x_in = x.reshape(b, c, s)
        in_specs = [mod_spec,
                    pl.BlockSpec((1, c, ts), lambda i, j: (i, 0, j))]
        operands = [mod, x_in]
        if has_prev:
            in_specs.append(pl.BlockSpec((1, 1, ts), lambda i, j: (i, 0, j)))
            operands.append(prev_rgb.reshape(b, 1, s))
        out_spec = pl.BlockSpec((1, 1, ts), lambda i, j: (i, 0, j))
        out_shape = jax.ShapeDtypeStruct((b, 1, s), out_dtype)
        kernel = functools.partial(_rgb_kernel_flat, has_prev=has_prev, unroll_c=unroll_c)
        block_elems = ts

    # VMEM budget: double-buffered x + prev + out blocks (+ slack); safe on v5e/v6e/v7x.
    block_bytes = block_elems * (c * x_item + out_item + (prev_item if has_prev else 0))
    vmem_limit = int(min(max(4 * block_bytes + (2 << 20), 16 << 20), 48 << 20))

    cost = pl.CostEstimate(
        flops=2 * b * c * s,
        transcendentals=0,
        bytes_accessed=int(b * c * s * x_item + b * s * out_item
                           + (b * s * prev_item if has_prev else 0) + b * c * 4))

    out = pl.pallas_call(
        kernel,
        grid=(b, n_blk),
        in_specs=in_specs,
        out_specs=out_spec,
        out_shape=out_shape,
        compiler_params=pltpu.CompilerParams(
            dimension_semantics=("parallel", "parallel"),
            vmem_limit_bytes=vmem_limit),
        cost_estimate=cost,
    )(*operands)

    # TODO(synk): upsample=True path (trilinear 2x Upsample + Blur/filter3d) not
    # implemented in Pallas; this module instance corresponds to upsample=False.
    return out.reshape(b, 1, d, h, w)


def reference_forward(x, prev_rgb, istyle, params):
    """Pure-JAX reference mirroring the PyTorch forward (f32)."""
    style = istyle @ params["to_style_w"].T + params["to_style_b"]   # (B, C)
    wconv = params["conv_w"].reshape(-1)                             # (C,)
    mod = wconv[None, :] * (style + 1.0)                             # (B, C)
    out = jnp.einsum("bc,bcdhw->bdhw", mod, x)[:, None]              # (B,1,D,H,W)
    if prev_rgb is not None:
        out = out + prev_rgb
    return out


def init_params(key, latent_dim, input_channel):
    k1, k2, k3 = jax.random.split(key, 3)
    # nn.Linear(latent_dim, input_channel): weight (C, L), bias (C,)
    bound = 1.0 / jnp.sqrt(latent_dim)
    to_style_w = jax.random.uniform(k1, (input_channel, latent_dim),
                                    minval=-bound, maxval=bound, dtype=jnp.float32)
    to_style_b = jax.random.uniform(k2, (input_channel,),
                                    minval=-bound, maxval=bound, dtype=jnp.float32)
    # Conv3DMod weight: (out=1, in=C, 1, 1, 1), kaiming_normal(fan_in, leaky_relu a=0)
    fan_in = input_channel
    std = jnp.sqrt(2.0 / fan_in)
    conv_w = std * jax.random.normal(k3, (1, input_channel, 1, 1, 1), dtype=jnp.float32)
    return {"to_style_w": to_style_w, "to_style_b": to_style_b, "conv_w": conv_w}


if __name__ == "__main__":
    key = jax.random.PRNGKey(0)
    LATENT = 32

    # ---- Case 1: small C (unrolled channel FMA), dense layout, with prev_rgb ----
    B, C, D, H, W = 2, 4, 8, 8, 8
    kx, kp, ks, kw, key = jax.random.split(key, 5)
    x = jax.random.normal(kx, (B, C, D, H, W), dtype=jnp.float32)
    prev_rgb = jax.random.normal(kp, (B, 1, D, H, W), dtype=jnp.float32)
    istyle = jax.random.normal(ks, (B, LATENT), dtype=jnp.float32)
    params = init_params(kw, LATENT, C)
    out = jax.block_until_ready(rgb_block_forward(x, prev_rgb, istyle, params))
    ref = reference_forward(x, prev_rgb, istyle, params)
    assert out.shape == (B, 1, D, H, W)
    assert jnp.allclose(out, ref, atol=1e-5, rtol=1e-5), "case1 mismatch vs reference"

    # ---- Case 2: larger C (fori channel loop), ragged S (no-pad flat path), no prev ----
    B2, C2, D2, H2, W2 = 2, 40, 5, 6, 7
    kx2, ks2, kw2, key = jax.random.split(key, 4)
    x2 = jax.random.normal(kx2, (B2, C2, D2, H2, W2), dtype=jnp.float32)
    istyle2 = jax.random.normal(ks2, (B2, LATENT), dtype=jnp.float32)
    params2 = init_params(kw2, LATENT, C2)
    out2 = jax.block_until_ready(rgb_block_forward(x2, None, istyle2, params2))
    ref2 = reference_forward(x2, None, istyle2, params2)
    assert out2.shape == (B2, 1, D2, H2, W2)
    assert jnp.allclose(out2, ref2, atol=2e-4, rtol=2e-4), "case2 mismatch vs reference"

    # ---- Case 3: larger C on the dense path (dynamic channel index), with prev ----
    B3, C3, D3, H3, W3 = 1, 48, 4, 8, 8
    kx3, kp3, ks3, kw3, key = jax.random.split(key, 5)
    x3 = jax.random.normal(kx3, (B3, C3, D3, H3, W3), dtype=jnp.float32)
    prev3 = jax.random.normal(kp3, (B3, 1, D3, H3, W3), dtype=jnp.float32)
    istyle3 = jax.random.normal(ks3, (B3, LATENT), dtype=jnp.float32)
    params3 = init_params(kw3, LATENT, C3)
    out3 = jax.block_until_ready(rgb_block_forward(x3, prev3, istyle3, params3))
    ref3 = reference_forward(x3, prev3, istyle3, params3)
    assert out3.shape == (B3, 1, D3, H3, W3)
    assert jnp.allclose(out3, ref3, atol=2e-4, rtol=2e-4), "case3 mismatch vs reference"

    print("KERNEL_OK")
</pallas_src>

<mosaic_0001>
module attributes {stable_mosaic.version = 11 : i64} {
  func.func @_rgb_kernel_dense(%arg0: i32, %arg1: i32, %arg2: memref<2x4xf32, #tpu.memory_space<smem>>, %arg3: memref<1x4x4x128xf32, #tpu.memory_space<vmem>>, %arg4: memref<1x1x4x128xf32, #tpu.memory_space<vmem>>, %arg5: memref<1x1x4x128xf32, #tpu.memory_space<vmem>>) attributes {dimension_semantics = [#tpu.dimension_semantics<parallel>, #tpu.dimension_semantics<parallel>], iteration_bounds = array<i64: 2, 1>, scalar_prefetch = 0 : i64, scratch_operands = 0 : i64, tpu.core_type = #tpu.core_type<tc>, window_params = [{transform_indices = @transform_0, window_bounds = array<i64: 2, 4>}, {transform_indices = @transform_1, window_bounds = array<i64: 1, 4, 4, 128>}, {transform_indices = @transform_2, window_bounds = array<i64: 1, 1, 4, 128>}, {transform_indices = @transform_3, window_bounds = array<i64: 1, 1, 4, 128>}]} {
    %c0 = arith.constant 0 : index
    %c0_0 = arith.constant 0 : index
    %c0_1 = arith.constant 0 : index
    %c0_2 = arith.constant 0 : index
    %0 = vector.load %arg3[%c0, %c0_0, %c0_1, %c0_2] : memref<1x4x4x128xf32, #tpu.memory_space<vmem>>, vector<1x1x4x128xf32>
    %1 = vector.shape_cast %0 : vector<1x1x4x128xf32> to vector<4x128xf32>
    %2 = arith.index_cast %arg0 : i32 to index
    %c0_3 = arith.constant 0 : index
    %3 = memref.load %arg2[%2, %c0_3] : memref<2x4xf32, #tpu.memory_space<smem>>
    %4 = vector.broadcast %3 : f32 to vector<4x128xf32>
    %5 = arith.mulf %1, %4 : vector<4x128xf32>
    %c0_4 = arith.constant 0 : index
    %c1 = arith.constant 1 : index
    %c0_5 = arith.constant 0 : index
    %c0_6 = arith.constant 0 : index
    %6 = vector.load %arg3[%c0_4, %c1, %c0_5, %c0_6] : memref<1x4x4x128xf32, #tpu.memory_space<vmem>>, vector<1x1x4x128xf32>
    %7 = vector.shape_cast %6 : vector<1x1x4x128xf32> to vector<4x128xf32>
    %8 = arith.index_cast %arg0 : i32 to index
    %c1_7 = arith.constant 1 : index
    %9 = memref.load %arg2[%8, %c1_7] : memref<2x4xf32, #tpu.memory_space<smem>>
    %10 = vector.broadcast %9 : f32 to vector<4x128xf32>
    %11 = arith.mulf %7, %10 : vector<4x128xf32>
    %12 = arith.addf %5, %11 : vector<4x128xf32>
    %c0_8 = arith.constant 0 : index
    %c2 = arith.constant 2 : index
    %c0_9 = arith.constant 0 : index
    %c0_10 = arith.constant 0 : index
    %13 = vector.load %arg3[%c0_8, %c2, %c0_9, %c0_10] : memref<1x4x4x128xf32, #tpu.memory_space<vmem>>, vector<1x1x4x128xf32>
    %14 = vector.shape_cast %13 : vector<1x1x4x128xf32> to vector<4x128xf32>
    %15 = arith.index_cast %arg0 : i32 to index
    %c2_11 = arith.constant 2 : index
    %16 = memref.load %arg2[%15, %c2_11] : memref<2x4xf32, #tpu.memory_space<smem>>
    %17 = vector.broadcast %16 : f32 to vector<4x128xf32>
    %18 = arith.mulf %14, %17 : vector<4x128xf32>
    %19 = arith.addf %12, %18 : vector<4x128xf32>
    %c0_12 = arith.constant 0 : index
    %c3 = arith.constant 3 : index
    %c0_13 = arith.constant 0 : index
    %c0_14 = arith.constant 0 : index
    %20 = vector.load %arg3[%c0_12, %c3, %c0_13, %c0_14] : memref<1x4x4x128xf32, #tpu.memory_space<vmem>>, vector<1x1x4x128xf32>
    %21 = vector.shape_cast %20 : vector<1x1x4x128xf32> to vector<4x128xf32>
    %22 = arith.index_cast %arg0 : i32 to index
    %c3_15 = arith.constant 3 : index
    %23 = memref.load %arg2[%22, %c3_15] : memref<2x4xf32, #tpu.memory_space<smem>>
    %24 = vector.broadcast %23 : f32 to vector<4x128xf32>
    %25 = arith.mulf %21, %24 : vector<4x128xf32>
    %26 = arith.addf %19, %25 : vector<4x128xf32>
    %c0_16 = arith.constant 0 : index
    %c0_17 = arith.constant 0 : index
    %c0_18 = arith.constant 0 : index
    %c0_19 = arith.constant 0 : index
    %27 = vector.load %arg4[%c0_16, %c0_17, %c0_18, %c0_19] : memref<1x1x4x128xf32, #tpu.memory_space<vmem>>, vector<1x1x4x128xf32>
    %28 = vector.shape_cast %27 : vector<1x1x4x128xf32> to vector<4x128xf32>
    %29 = arith.addf %26, %28 : vector<4x128xf32>
    %c0_20 = arith.constant 0 : index
    %c0_21 = arith.constant 0 : index
    %c0_22 = arith.constant 0 : index
    %c0_23 = arith.constant 0 : index
    %30 = vector.load %arg5[%c0_20, %c0_21, %c0_22, %c0_23] : memref<1x1x4x128xf32, #tpu.memory_space<vmem>>, vector<1x1x4x128xf32>
    %31 = vector.shape_cast %30 : vector<1x1x4x128xf32> to vector<4x128xf32>
    %32 = vector.shape_cast %29 : vector<4x128xf32> to vector<1x1x4x128xf32>
    tpu.vector_store %arg5[%c0_20, %c0_21, %c0_22, %c0_23], %32 {strides = array<i32>} : memref<1x1x4x128xf32, #tpu.memory_space<vmem>>, vector<1x1x4x128xf32>,
    return
  }
  func.func @transform_0(%arg0: i32, %arg1: i32) -> (i32, i32) {
    %c0_i32 = arith.constant 0 : i32
    %c0_i32_0 = arith.constant 0 : i32
    %c0_i32_1 = arith.constant 0 : i32
    return %c0_i32, %c0_i32_0 : i32, i32
  }
  func.func @transform_1(%arg0: i32, %arg1: i32) -> (i32, i32, i32, i32) {
    %c0_i32 = arith.constant 0 : i32
    %c0_i32_0 = arith.constant 0 : i32
    %c0_i32_1 = arith.constant 0 : i32
    return %arg0, %c0_i32, %arg1, %c0_i32_0 : i32, i32, i32, i32
  }
  func.func @transform_2(%arg0: i32, %arg1: i32) -> (i32, i32, i32, i32) {
    %c0_i32 = arith.constant 0 : i32
    %c0_i32_0 = arith.constant 0 : i32
    %c0_i32_1 = arith.constant 0 : i32
    return %arg0, %c0_i32, %arg1, %c0_i32_0 : i32, i32, i32, i32
  }
  func.func @transform_3(%arg0: i32, %arg1: i32) -> (i32, i32, i32, i32) {
    %c0_i32 = arith.constant 0 : i32
    %c0_i32_0 = arith.constant 0 : i32
    %c0_i32_1 = arith.constant 0 : i32
    return %arg0, %c0_i32, %arg1, %c0_i32_0 : i32, i32, i32, i32
  }
}

</mosaic_0001>

<bundles_post_ra>
// kernel: tpu_custom_call.1
= control target key start
LH: loop header
LB: loop body
LE: loop exit
PB: predicated region body
PF: predicated region fallthrough
CT: control target
= control target key end

     0   :  { %s950_s0 = inlined_call_operand.hbm [shape: f32[2,4], index: 0, kind: input, shape index: {}]   ;;  %s951_s1 = inlined_call_operand.hbm [shape: f32[2,4,4,128], index: 1, kind: input, shape index: {}]   ;;  %s952_s2 = inlined_call_operand.hbm [shape: f32[2,1,4,128], index: 2, kind: input, shape index: {}]   ;;  %s953_s3 = inlined_call_operand.hbm [shape: f32[2,1,4,128], index: 3, kind: output, shape index: {}]  }
   0x1   :  { %959 = sst [smem:[#allocation14_spill]] %s950_s0 }
   0x2   :  { %960 = sst [smem:[#allocation15_spill]] %s951_s1 }
   0x3   :  { %8 = vsyncpa [#allocation5], 0 }
   0x4   :  { %9 = vsyncpa [#allocation3], 0 }
   0x5   :  { %11 = vsyncpa [#allocation3 + $0x1], 0 }
   0x6   :  { %12 = vsyncpa [#allocation8], 0 }
   0x7   :  { %14 = vsyncpa [#allocation8 + $0x1], 0 }
   0x8   :  { %15 = vsyncpa [#allocation4], 0 }
   0x9   :  { %17 = vsyncpa [#allocation4 + $0x1], 0  ;;  %s714_s12 = smov 0   ;;  %s716_s13 = smov 0  }
   0xa   :  { %s718_s14 = smov 0   ;;  %s720_s15 = smov 0  }
   0xb   :  { %s722_s16 = smov 0   ;;  %s724_s17 = smov 0  }
   0xc LB: > { %s419_s18 = sadd.s32 4294967295, %s686_s17   ;;  %s420_s19 = sadd.s32 4294967294, %s686_s17   ;;  %s686_s17 = sphi %s724_s17, %s23_s17   ;;  %s682_s16 = sphi %s722_s16, %s979_s16   ;;  %s678_s15 = sphi %s720_s15, %s978_s15   ;;  %s674_s14 = sphi %s718_s14, %s977_s14   ;;  %s670_s13 = sphi %s716_s13, %s976_s13   ;;  %s666_s12 = sphi %s714_s12, %s975_s12  }
   0xd   : > { %s65_s20 = sadd.s32 1, %s674_s14  ;;  %p72_p0 = scmp.ne.s32.totalorder %s674_s14, %s670_s13 }
   0xe   : > { %p73_p1 = scmp.eq.s32.totalorder %s686_s17, 0  ;;  %p78_p2 = scmp.ne.s32.totalorder %s670_s13, %s666_s12 }
   0xf   : > { %p752_p3 = scmp.eq.s32.totalorder %s419_s18, 0  ;;  %p132_p4 = scmp.eq.s32.totalorder %s419_s18, 1 }
  0x10   : > { %p74_p5 = por %p73_p1, %p72_p0  ;;  %p138_p6 = scmp.eq.s32.totalorder %s420_s19, 1 }
  0x11   : > { %s961_s21 = scalar_select %p752_p3, 1, 0 }
  0x12   : > { %p758_p7 = por %p752_p3, %p78_p2  ;;  %p762_p8 = por %p132_p4, %p72_p0 }
  0x13   : > { %p766_p9 = por %p138_p6, %p78_p2  ;;  %p421_p10 = scmp.ge.s32.totalorder %s686_s17, 1 }
  0x14   : > { %s962_s22 = scalar_select %p758_p7, 1, 0 }
  0x15   : > { %s963_s23 = scalar_select %p762_p8, 1, 0 }
  0x16   : > { %s964_s24 = scalar_select %p766_p9, 1, 0 }
  0x17   : > { %p145_p11 = scmp.lt.s32.totalorder %s686_s17, 3  ;;  %p469_p1 = scmp.lt.s32.totalorder %s686_s17, 2 }
  0x18   : > { %s779_s26 = sand.u32 1, %s674_s14   ;;  %s35_s28 = sadd.s32 1, %s682_s16 }
  0x19   : > { %p773_p13 = pnand %p421_p10, %p145_p11  ;;  %p783_p4 = pnand %p469_p1, %p74_p5 }
  0x1a   : > { %s424_s29 = sshll.u32 %s779_s26, 4  ;;  %p37_p6 = scmp.ge.s32.totalorder %s35_s28, 2 }
  0x1b   : > { %s965_s25 = scalar_select %p773_p13, 1, 0 }
  0x1c   : > { %p453_p0 = pneg %p773_p13  ;;  %s967_s0 = sld [smem:[#allocation14_spill]] }
  0x1e   : > { %p454_p2 = pnand %p453_p0, %p752_p3 }
  0x20   : > { %p525_p11 = pneg %p454_p2 }
  0x22   : > { %s523_s5 = scalar_lea.hbm %s967_s0, 32 }
  0x23   : > { %p524_p10 = scmp.ne.s32.totalorder %s967_s0, %s523_s5  ;;  %p530_p5 = scmp.lt.u32.totalorder %s523_s5, %s967_s0 }
  0x25   : > { %p526_p12 = pnand %p525_p11, %p524_p10 }
  0x27   : > { %p527_p9 = pneg %p526_p12 }
  0x29   : > { %p532_p1 = pnand %p530_p5, %p527_p9 }
  0x2b   : > { %535 = shalt.err (!%p532_p1)
}
  0x2c   : > { %s688_s10 = smov [#allocation2]   ;;  %s981_s28 = smov (%p37_p6, %s35_s28), 0 }
  0x2d   : > { %456 = dma.hbm_to_smem (!%p454_p2), %s967_s0, 32, %s688_s10, [#allocation5]  }
  0x2e   : > { %s442_s19 = sshll.u32 %s682_s16, 8  ;;  %s60_s30 = ssub.s32 %s682_s16, %s981_s28 }
  0x2f   : > { %s968_s1 = sld [smem:[#allocation15_spill]]  ;;  %p63_p9 = scmp.eq.s32.totalorder %s60_s30, 0 }
  0x30   : > { %s171_s7 = scalar_lea.vmem [#allocation6], %s424_s29  ;;  %s168_s10 = scalar_lea.sflag [#allocation3], %s779_s26 }
  0x31   : > { %s179_s8 = sshll.u32 %s171_s7, 4  ;;  %p538_p0 = pneg %p783_p4  ;;  %s813_s8 = int_to_ptr.vmem [resolvable:$true] %s179_s8 }
  0x32   : > { %s818_s9 = scalar_select %p63_p9, %s674_s14, %s65_s20  }
  0x35   : > { %s811_s6 = scalar_lea.hbm %s968_s1, %s442_s19  ;;  %s541_s30 = scalar_lea.hbm %s968_s1, 512 }
  0x36   : > { %s536_s11 = scalar_lea.hbm %s811_s6, 256  ;;  %p542_p10 = scmp.lt.u32.totalorder %s811_s6, %s968_s1 }
  0x37   : > { %p537_p12 = scmp.ne.s32.totalorder %s811_s6, %s536_s11  ;;  %p543_p11 = scmp.lt.u32.totalorder %s541_s30, %s536_s11 }
  0x38   : > { %p545_p1 = scmp.lt.u32.totalorder %s536_s11, %s811_s6 }
  0x39   : > { %p539_p2 = pnand %p538_p0, %p537_p12  ;;  %p544_p5 = por %p543_p11, %p542_p10 }
  0x3b   : > { %p540_p6 = pneg %p539_p2  ;;  %p546_p9 = por %p545_p1, %p544_p5 }
  0x3d   : > { %p547_p8 = pnand %p546_p9, %p540_p6 }
  0x3f   : > { %550 = shalt.err (!%p547_p8)
}
  0x40   : > { %s551_s20 = scalar_lea.vmem %s813_s8, 256  ;;  %s689_s5 = smov [#allocation6]  }
  0x41   : > { %p552_p12 = scmp.ne.s32.totalorder %s813_s8, %s551_s20  ;;  %s556_s7 = sshll.u32 %s689_s5, 4  ;;  %s557_s7 = int_to_ptr.vmem [resolvable:$false] %s556_s7 }
  0x42   : > { %s558_s18 = scalar_lea.vmem %s557_s7, 512  ;;  %p559_p3 = scmp.lt.s32.totalorder %s813_s8, %s557_s7 }
  0x43   : > { %p554_p2 = pnand %p552_p12, %p538_p0  ;;  %p560_p10 = scmp.lt.s32.totalorder %s558_s18, %s551_s20 }
  0x45   : > { %p555_p7 = pneg %p554_p2  ;;  %p561_p11 = por %p560_p10, %p559_p3 }
  0x47   : > { %p562_p5 = pnand %p561_p11, %p555_p7 }
  0x49   : > { %565 = shalt.err (!%p562_p5)
}
  0x4a   : > { %s690_s11 = smov 64   ;;  %s691_s19 = smov 4  }
  0x4b   : > { %460 = dma.hbm_to_vmem [thread:$0]  (!%p783_p4), %s811_s6, 256, %s813_s8, %s168_s10, %s690_s11, %s690_s11, %s691_s19  }
  0x4c   : > { %s427_s30 = sshll.u32 %s779_s26, 2  ;;  %s428_s29 = sshll.u32 %s682_s16, 6 }
  0x4d   : > { %s853_s5 = scalar_lea.hbm %s952_s2, %s428_s29  ;;  %s193_s7 = scalar_lea.vmem [#allocation7], %s427_s30 }
  0x4e   : > { %s201_s18 = sshll.u32 %s193_s7, 4  ;;  %s190_s0 = scalar_lea.sflag [#allocation8], %s779_s26  ;;  %s202_s18 = int_to_ptr.vmem [resolvable:$true] %s201_s18 }
  0x4f   : > { %s566_s1 = scalar_lea.hbm %s853_s5, 64  ;;  %s571_s10 = scalar_lea.hbm %s952_s2, 128 }
  0x50   : > { %p567_p3 = scmp.ne.s32.totalorder %s853_s5, %s566_s1  ;;  %p572_p6 = scmp.lt.u32.totalorder %s853_s5, %s952_s2 }
  0x51   : > { %p573_p1 = scmp.lt.u32.totalorder %s571_s10, %s566_s1  ;;  %p575_p12 = scmp.lt.u32.totalorder %s566_s1, %s853_s5 }
  0x52   : > { %p569_p7 = pnand %p567_p3, %p538_p0 }
  0x53   : > { %p574_p9 = por %p573_p1, %p572_p6 }
  0x54   : > { %p570_p8 = pneg %p569_p7 }
  0x55   : > { %p576_p2 = por %p575_p12, %p574_p9 }
  0x57   : > { %p577_p10 = pnand %p576_p2, %p570_p8 }
  0x59   : > { %580 = shalt.err (!%p577_p10)
}
  0x5a   : > { %s581_s26 = scalar_lea.vmem %s202_s18, 64  ;;  %s692_s30 = smov [#allocation7]  }
  0x5b   : > { %p582_p11 = scmp.ne.s32.totalorder %s202_s18, %s581_s26  ;;  %s586_s29 = sshll.u32 %s692_s30, 4  ;;  %s587_s29 = int_to_ptr.vmem [resolvable:$false] %s586_s29 }
  0x5c   : > { %s588_s4 = scalar_lea.vmem %s587_s29, 128  ;;  %p589_p7 = scmp.lt.s32.totalorder %s202_s18, %s587_s29 }
  0x5d   : > { %p584_p5 = pnand %p582_p11, %p538_p0  ;;  %p590_p13 = scmp.lt.s32.totalorder %s588_s4, %s581_s26 }
  0x5f   : > { %p585_p3 = pneg %p584_p5  ;;  %p591_p1 = por %p590_p13, %p589_p7 }
  0x61   : > { %p592_p6 = pnand %p591_p1, %p585_p3 }
  0x63   : > { %595 = shalt.err (!%p592_p6)
}
  0x64   : > { %463 = dma.hbm_to_vmem [thread:$0]  (!%p783_p4), %s853_s5, 64, %s202_s18, %s190_s0  }
  0x65   : > { %p969_p8 = scmp.ne.s32.totalorder %s965_s25, 0 }
  0x66   : > { %p970_p9 = scmp.ne.s32.totalorder (!%p969_p8), %s961_s21, 0 }
  0x67   : > { %210 = sbr.rel (%p969_p8) target bundleno = 153 (0x99), region = 32 }
  0x6e   : > { %649 = dma.done.wait (%p970_p9), [#allocation5], 32  }
  0x6f   : > { %651 = vsyncadd (%p970_p9), [#allocation5], 4294967264  ;;  %s882_s1 = sand.u32 1, %s670_s13   ;;  %p971_p13 = scmp.ne.s32.totalorder %s962_s22, 0 }
  0x70   : > { %s431_s20 = sshll.u32 %s882_s1, 4  ;;  %s217_s7 = scalar_lea.sflag [#allocation3], %s882_s1 }
  0x71   : > { %s220_s27 = scalar_lea.vmem [#allocation6], %s431_s20 }
  0x72   : > { %653 = dma.done.wait (%p971_p13), %s217_s7, 256  }
  0x73   : > { %655 = vsyncadd (%p971_p13), %s217_s7, 4294967040  ;;  %s432_s0 = sshll.u32 %s882_s1, 2  ;;  %s226_s21 = scalar_lea.sflag [#allocation8], %s882_s1 }
  0x74   : > { %s229_s25 = scalar_lea.vmem [#allocation7], %s432_s0 }
  0x75   : > { %657 = dma.done.wait (%p971_p13), %s226_s21, 64  }
  0x76   : > { %659 = vsyncadd (%p971_p13), %s226_s21, 4294967232 }
  0x77   : > { %234 = sfence }
  0x78   : > { %s434_s5 = sshll.u32 %s678_s15, 7  ;;  %v258_v0 = vld [vmem:[%s220_s27] sm:$0xf]  ;;  %v435_v1 = vld [vmem:[%s220_s27 + $0x4] sm:$0xf]  ;;  %s257_s22 = scalar_lea.vmem [#allocation9], %s432_s0 }
  0x79   : > { %s260_s18 = sld [smem:[#allocation2 + %s434_s5]]  ;;  %s265_s6 = sadd.s32 1, %s434_s5  ;;  %v436_v3 = vld [vmem:[%s220_s27 + $0x8] sm:$0xf]  ;;  %v437_v6 = vld [vmem:[%s220_s27 + $0xc] sm:$0xf] }
  0x7a   : > { %s266_s8 = sld [smem:[#allocation2 + %s265_s6]]  ;;  %s272_s10 = sadd.s32 2, %s434_s5  ;;  %v284_v14 = vld [vmem:[%s229_s25] sm:$0xf] }
  0x7b   : > { %s273_s11 = sld [smem:[#allocation2 + %s272_s10]]  ;;  %s279_s19 = sadd.s32 3, %s434_s5 }
  0x7c   : > { %s280_s26 = sld [smem:[#allocation2 + %s279_s19]]  ;;  %s302_s30 = sshll.u32 %s257_s22, 4  ;;  %s898_s30 = int_to_ptr.vmem [resolvable:$true] %s302_s30 }
  0x7d   : > { %s439_s29 = sshll.u32 %s678_s15, 6  ;;  %s288_s27 = scalar_lea.sflag [#allocation4], %s882_s1 }
  0x7e   : > { %s903_s7 = scalar_lea.hbm %s953_s3, %s439_s29  ;;  %s596_s21 = scalar_lea.vmem %s898_s30, 64 }
  0x7f   : > { %v261_v2 = vstv %s260_s18  ;;  %p597_p4 = scmp.ne.s32.totalorder %s898_s30, %s596_s21  ;;  %p972_p0 = scmp.ne.s32.totalorder %s963_s23, 0 }
  0x80   : > { %v262_v4 = vmul.f32 %v261_v2, %v258_v0  ;;  %v267_v5 = vstv %s266_s8  ;;  %s693_s15 = smov [#allocation9]  }
  0x81   : > { %v268_v7 = vmul.f32 %v435_v1, %v267_v5  ;;  %v274_v8 = vstv %s273_s11  ;;  %p598_p12 = pnand %p597_p4, %p972_p0  ;;  %s600_s0 = sshll.u32 %s693_s15, 4  ;;  %s601_s0 = int_to_ptr.vmem [resolvable:$false] %s600_s0 }
  0x82   : > { %v275_v9 = vmul.f32 %v436_v3, %v274_v8  ;;  %v281_v10 = vstv %s280_s26  ;;  %s602_s25 = scalar_lea.vmem %s601_s0, 128  ;;  %p603_p10 = scmp.lt.s32.totalorder %s898_s30, %s601_s0 }
  0x83   : > { %v269_v11 = vadd.f32 %v268_v7, %v262_v4  ;;  %v282_v12 = vmul.f32 %v437_v6, %v281_v10  ;;  %p599_p2 = pneg %p598_p12  ;;  %p604_p11 = scmp.lt.s32.totalorder %s602_s25, %s596_s21 }
  0x85   : > { %v276_v13 = vadd.f32 %v275_v9, %v269_v11  ;;  %p605_p5 = por %p604_p11, %p603_p10 }
  0x87   : > { %v283_v15 = vadd.f32 %v282_v12, %v276_v13  ;;  %p606_p3 = pnand %p605_p5, %p599_p2 }
  0x89   : > { %v285_v16 = vadd.f32 %v284_v14, %v283_v15 }
  0x8b   : > { %286 = vst [vmem:[%s257_s22] sm:$0xf] %v285_v16 }
  0x8c   : > { %609 = shalt.err (!%p606_p3)
}
  0x8d   : > { %s610_s1 = scalar_lea.hbm %s903_s7, 64  ;;  %s614_s6 = scalar_lea.hbm %s953_s3, 128 }
  0x8e   : > { %p611_p7 = scmp.ne.s32.totalorder %s903_s7, %s610_s1  ;;  %p615_p8 = scmp.lt.u32.totalorder %s903_s7, %s953_s3 }
  0x8f   : > { %p616_p9 = scmp.lt.u32.totalorder %s614_s6, %s610_s1  ;;  %p618_p4 = scmp.lt.u32.totalorder %s610_s1, %s903_s7 }
  0x90   : > { %p612_p1 = pnand %p611_p7, %p972_p0 }
  0x91   : > { %p617_p13 = por %p616_p9, %p615_p8 }
  0x92   : > { %p613_p6 = pneg %p612_p1 }
  0x93   : > { %p619_p12 = por %p618_p4, %p617_p13 }
  0x95   : > { %p620_p2 = pnand %p619_p12, %p613_p6 }
  0x97   : > { %623 = shalt.err (!%p620_p2)
}
  0x98   : > { %451 = dma.vmem_to_hbm [thread:$0]  (%p972_p0), %s898_s30, 64, %s903_s7, %s288_s27  }
  0x99 PF: > { %s314_s11 = sand.u32 1, %s666_s12   ;;  %p973_p10 = scmp.ne.s32.totalorder %s964_s24, 0 }
  0x9a   : > { %p974_p11 = scmp.ge.s32.totalorder %s686_s17, 2  ;;  %s315_s19 = scalar_lea.sflag [#allocation4], %s314_s11 }
  0x9c   : > { %p465_p5 = pnand %p974_p11, %p973_p10 }
  0x9e   : > { %661 = dma.done.wait (!%p465_p5), %s315_s19, 64  }
  0x9f   : > { %663 = vsyncadd (!%p465_p5), %s315_s19, 4294967232  ;;  %s23_s17 = sadd.s32 1, %s686_s17   ;;  %s975_s12 = smov %s670_s13 }
  0xa0   : > { %p20_p3 = scmp.ge.s32.totalorder %s23_s17, 4   ;;  %s976_s13 = smov %s674_s14 }
  0xa1   : > { %s977_s14 = smov %s818_s9  ;;  %s978_s15 = smov %s682_s16 }
  0xa2   : > { %s979_s16 = smov %s981_s28  ;;  %22 = sbr.rel (!%p20_p3) target bundleno = 12 (0xc), region = 98 }
  0xa9   :  { %320 = vsyncpa [#allocation3], 1 }
  0xaa   :  { %322 = vsyncpa [#allocation3 + $0x1], 1 }
  0xab   :  { %323 = vsyncpa [#allocation8], 1 }
  0xac   :  { %325 = vsyncpa [#allocation8 + $0x1], 1 }
  0xad   :  { %326 = vsyncpa [#allocation4], 1 }
  0xae   :  { %328 = vsyncpa [#allocation4 + $0x1], 1 }
  0xaf   :  { %329 = vsyncpa [#allocation5], 1 }
  0xb0   :  { %331 = vsyncpa [#allocation5 + $0x1], 1 }

</bundles_post_ra>
